<compile_context>
chip_gen: v6e
topology: v6e:2x2x1
jax: 0.10.0
libtpu: 0.0.40
codegen_flags: <defaults>
</compile_context>

<pallas_src>
import numpy as np
import jax
import jax.numpy as jnp
from jax.experimental import pallas as pl
from jax.experimental.pallas import tpu as pltpu


# -----------------------------------------------------------------------------
# Fused decoder kernel (one grid step == one block of `bt` batch elements,
# stacked on the lane axis)
# -----------------------------------------------------------------------------
def _make_decoder_kernel(stage_meta):
    """stage_meta: list of dicts with static ints/bools: k, c_out_pad, actv."""
    n = len(stage_meta)

    def kernel(*refs):
        x_ref = refs[0]                  # (1, C0, bt*L0)
        e_refs = refs[1:1 + n]           # per-stage skip feature maps (1, Ce, bt*L_in)
        w_refs = refs[1 + n:-1]          # per stage: wx, we, wsp, bias  (4 refs each)
        o_ref = refs[-1]                 # (1, Cp_last, bt*L_last)

        x = x_ref[0]                     # (C0, bt*L0) -- stays on-chip across all stages
        for i, m in enumerate(stage_meta):
            e = e_refs[i][0]                       # (Ce, bt*L_in)
            wx = w_refs[4 * i][...]                # (K*cp, Cx_pad)
            we = w_refs[4 * i + 1][...]            # (K*cp, Ce)
            wsp_ref = w_refs[4 * i + 2]            # (K, bt*L_in, bt*L_out)  block-diag
            bias = w_refs[4 * i + 3][...]          # (cp, 1)

            k = m["k"]
            cp = m["c_out_pad"]

            # Channel mixing at input resolution; all K taps in one MXU pass per source.
            t = (jnp.dot(wx, x, preferred_element_type=jnp.float32)
                 + jnp.dot(we, e, preferred_element_type=jnp.float32))   # (K*cp, bt*L_in)

            # Per-tap spatial operator (interp + zero border + tap shift folded in).
            # Sublane slices at multiples of 8 -> free views; lane offset always 0.
            acc = jnp.dot(t[0:cp, :], wsp_ref[0],
                          preferred_element_type=jnp.float32)            # (cp, bt*L_out)
            for kk in range(1, k):
                acc = acc + jnp.dot(t[kk * cp:(kk + 1) * cp, :], wsp_ref[kk],
                                    preferred_element_type=jnp.float32)

            acc = acc + bias
            if m["actv"]:
                acc = jnp.maximum(acc, 0.01 * acc)                       # LeakyReLU(0.01)
            x = acc

        o_ref[0] = x.astype(o_ref.dtype)

    return kernel


def conv_decoder_unet_forward(inpt_flat, encoder_feature_map, params, batch_block=None):
    """inpt_flat: (B, hidden_dims[0]*last_size[0]); encoder_feature_map: list of NCL arrays."""
    stages = params["stages"]
    n = len(stages)
    B = inpt_flat.shape[0]
    c0, l0 = params["c0"], params["l0"]

    # --- batch tiling: bt elements stacked on lanes per grid step ---------------
    if batch_block is None:
        # Small batch: one step (step-overhead dominates).  Larger batch: >=2 steps so
        # both v7x TensorCores get work ("parallel" grid axis).
        bt = B if B < 4 else -(-B // 2)
    else:
        bt = int(batch_block)
    n_steps = pl.cdiv(B, bt)
    b_pad = bt * n_steps

    x0 = inpt_flat.reshape(B, c0, l0)                      # inpt.view(self.inpt_shape)
    # encoder feature maps are consumed from the END of the list (U-Net skip order)
    efms = [encoder_feature_map[-(i + 1)] for i in range(n)]

    # host-side relayout: (B, C, L) -> (n_steps, C, bt*L)   (batch stacked on lanes)
    def lane_blocks(a):
        if b_pad != B:
            a = jnp.concatenate(
                [a, jnp.zeros((b_pad - B,) + a.shape[1:], a.dtype)], axis=0)
        _, c, l = a.shape
        return a.reshape(n_steps, bt, c, l).transpose(0, 2, 1, 3).reshape(n_steps, c, bt * l)

    x0b = lane_blocks(x0)
    efms_b = [lane_blocks(e) for e in efms]

    meta = [st["meta"] for st in stages]
    kernel = _make_decoder_kernel(meta)

    inputs = [x0b] + efms_b
    in_specs = [pl.BlockSpec((1, c0, bt * l0), lambda g: (g, 0, 0))]
    for e in efms_b:
        _, ce, lbt = e.shape
        in_specs.append(pl.BlockSpec((1, int(ce), int(lbt)), lambda g: (g, 0, 0)))

    # constant weights: same block for every grid step
    for st in stages:
        kk, l_in, l_out = st["s_taps"].shape
        eye = np.eye(bt, dtype=np.float32)
        wsp_bd = np.einsum("bc,kij->kbicj", eye, st["s_taps"]).reshape(
            kk, bt * l_in, bt * l_out)
        for arr in (st["wx"], st["we"], jnp.asarray(wsp_bd), st["bias"]):
            inputs.append(arr)
            nd = arr.ndim
            in_specs.append(pl.BlockSpec(tuple(int(s) for s in arr.shape),
                                         lambda g, nd=nd: (0,) * nd))

    cp_last = meta[-1]["c_out_pad"]
    c_last = meta[-1]["c_out"]
    l_last = meta[-1]["l_out"]

    out_k = pl.pallas_call(
        kernel,
        grid=(n_steps,),
        out_shape=jax.ShapeDtypeStruct((n_steps, cp_last, bt * l_last), jnp.float32),
        in_specs=in_specs,
        out_specs=pl.BlockSpec((1, cp_last, bt * l_last), lambda g: (g, 0, 0)),
        compiler_params=pltpu.CompilerParams(
            dimension_semantics=("parallel",),
            vmem_limit_bytes=64 * 1024 * 1024),
    )(*inputs)

    # (n_steps, cp_last, bt*l_last) -> (B, c_last, l_last); strip channel/batch padding.
    out = out_k.reshape(n_steps, cp_last, bt, l_last).transpose(0, 2, 1, 3)
    out = out.reshape(b_pad, cp_last, l_last)[:B, :c_last, :]
    return out


# -----------------------------------------------------------------------------
# Host-side (build-time) parameter preparation — done ONCE, not per forward call
# -----------------------------------------------------------------------------
def _round_up(x, m):
    return ((x + m - 1) // m) * m


def _linear_interp_matrix(l_in, l_out):
    """F.interpolate(mode='linear', align_corners=False) as a (l_out, l_in) matrix.
    Matches PyTorch: src = (dst+0.5)*scale - 0.5, clamped at 0; i1 clamped to l_in-1."""
    scale = l_in / l_out
    pos = (np.arange(l_out) + 0.5) * scale - 0.5
    pos = np.maximum(pos, 0.0)
    i0 = np.minimum(np.floor(pos).astype(np.int64), l_in - 1)
    i1 = np.minimum(i0 + 1, l_in - 1)
    w1 = np.clip(pos - i0, 0.0, 1.0)
    w0 = 1.0 - w1
    m = np.zeros((l_out, l_in), np.float32)
    m[np.arange(l_out), i0] += w0
    m[np.arange(l_out), i1] += w1
    return m


def _init_conv(key, c_out, c_in, k):
    """Deterministic Conv1d-style init (kaiming-uniform bound)."""
    kw, kb = jax.random.split(key)
    bound = 1.0 / np.sqrt(c_in * k)
    w = jax.random.uniform(kw, (c_out, c_in, k), jnp.float32, -bound, bound)
    b = jax.random.uniform(kb, (c_out,), jnp.float32, -bound, bound)
    return w, b


def _make_stage(w, b, cx_pad, cx, ce, k, l_in, l_out, interp, actv):
    """Pre-layout one decoder stage.

    cx      : number of REAL x-channels this stage's conv weight covers.
    cx_pad  : number of x-channels actually delivered by the previous stage (>= cx,
              extra channels are identically zero), so extra weight columns are zero.
    """
    assert k % 2 == 1, "only odd kernel sizes (SAME padding) are supported"
    w_np = np.asarray(w)
    b_np = np.asarray(b)
    c_out = w_np.shape[0]
    c_pad = _round_up(c_out, 8)              # sublane-aligned tap slices
    pad = (k - 1) // 2

    # channel-mix weights, K taps stacked on the M axis, output channels zero-padded
    wx = np.zeros((k * c_pad, cx_pad), np.float32)
    we = np.zeros((k * c_pad, ce), np.float32)
    for kk in range(k):
        wx[kk * c_pad:kk * c_pad + c_out, :cx] = w_np[:, :cx, kk]
        we[kk * c_pad:kk * c_pad + c_out, :] = w_np[:, cx:, kk]
    bias = np.zeros((c_pad, 1), np.float32)
    bias[:c_out, 0] = b_np

    # Per-tap spatial operators: S_k[j, l] = Interp[j, l + k - pad] inside the valid
    # range, zero elsewhere (the conv zero-padding border and tap shift folded in).
    wi = _linear_interp_matrix(l_in, l_out).T if interp else np.eye(l_in, dtype=np.float32)
    s_taps = np.zeros((k, l_in, l_out), np.float32)
    for kk in range(k):
        lo = max(0, pad - kk)
        hi = min(l_out, l_out + pad - kk)
        if hi > lo:
            s_taps[kk, :, lo:hi] = wi[:, lo + kk - pad:hi + kk - pad]

    return {
        "wx": jnp.asarray(wx),
        "we": jnp.asarray(we),
        "bias": jnp.asarray(bias),
        "s_taps": s_taps,                       # (K, L_in, L_out) numpy; batch block-diag
        "meta": {"k": k, "c_out": c_out, "c_out_pad": c_pad,
                 "l_out": l_out, "actv": actv},
    }


def build_decoder_params(key, out_channels, last_size, hidden_dims, sizes,
                         encoder_hidden_dims, kernel_sizes):
    """convDecoder_Unet params (dimension=1, bn=Identity, actv=LeakyReLU, last_conv='normal')."""
    n_up = len(hidden_dims) - 1
    keys = jax.random.split(key, n_up + 1)
    stages, raw = [], []
    l_in = last_size[0]
    cx_deliver = hidden_dims[0]                 # channels delivered to the first stage
    for i in range(n_up):                       # IntpConv1d + LeakyReLU stages
        cx, ce = hidden_dims[i], encoder_hidden_dims[i]
        c_out, k, l_out = hidden_dims[i + 1], kernel_sizes[i], sizes[i]
        w, b = _init_conv(keys[i], c_out, cx + ce, k)
        st = _make_stage(w, b, cx_deliver, cx, ce, k, l_in, l_out, interp=True, actv=True)
        stages.append(st)
        raw.append({"w": w, "b": b, "l_out": l_out, "interp": True, "actv": True})
        cx_deliver = st["meta"]["c_out_pad"]
        l_in = l_out
    # last_conv: Conv1d(unet_hidden_dims[-1] -> out_channels, k=3, pad=1), no interp/actv
    cx, ce, k = hidden_dims[-1], encoder_hidden_dims[-1], 3
    w, b = _init_conv(keys[-1], out_channels, cx + ce, k)
    st = _make_stage(w, b, cx_deliver, cx, ce, k, l_in, l_in, interp=False, actv=False)
    stages.append(st)
    raw.append({"w": w, "b": b, "l_out": l_in, "interp": False, "actv": False})
    return {"stages": stages, "raw": raw, "c0": hidden_dims[0], "l0": last_size[0]}


# -----------------------------------------------------------------------------
# Pure-JAX reference (no Pallas) for validation
# -----------------------------------------------------------------------------
def _ref_stage(x_ncl, l_out, w, b, actv, interp):
    _, _, l_in = x_ncl.shape
    if interp:
        scale = l_in / l_out
        pos = np.maximum((np.arange(l_out) + 0.5) * scale - 0.5, 0.0)
        i0 = np.minimum(np.floor(pos).astype(np.int32), l_in - 1)
        i1 = np.minimum(i0 + 1, l_in - 1)
        w1 = jnp.asarray(np.clip(pos - i0, 0.0, 1.0), jnp.float32)
        y = x_ncl[:, :, i0] * (1.0 - w1) + x_ncl[:, :, i1] * w1
    else:
        y = x_ncl
    out = jax.lax.conv_general_dilated(
        y, w, window_strides=(1,), padding="SAME",
        dimension_numbers=("NCH", "OIH", "NCH"))
    out = out + b[None, :, None]
    if actv:
        out = jnp.where(out >= 0, out, 0.01 * out)
    return out


def _ref_forward(inpt_flat, efm, params):
    x = inpt_flat.reshape(-1, params["c0"], params["l0"])
    idx = len(efm) - 1
    for st in params["raw"]:
        x = jnp.concatenate([x, efm[idx]], axis=1)
        idx -= 1
        x = _ref_stage(x, st["l_out"], st["w"], st["b"], st["actv"], st["interp"])
    return x


# -----------------------------------------------------------------------------
if __name__ == "__main__":
    key = jax.random.PRNGKey(0)

    # Module configuration (dimension=1)
    B = 2
    out_channels = 2
    last_size = [8]
    hidden_dims = [16, 8, 8]
    encoder_hidden_dims = [4, 4, 4]
    sizes = [16, 32]
    kernel_sizes = [3, 3, 3]

    kparams, kinput = jax.random.split(key)
    params = build_decoder_params(kparams, out_channels, last_size, hidden_dims,
                                  sizes, encoder_hidden_dims, kernel_sizes)

    # ---- inputs ----
    k_in, k_e0, k_e1, k_e2 = jax.random.split(kinput, 4)
    last_flat_size = hidden_dims[0] * last_size[0]
    inpt = jax.random.normal(k_in, (B, last_flat_size), jnp.float32)           # (2, 128)
    # encoder feature maps are consumed from the END of the list:
    #   efm[2]: spatial 8 (last_size), efm[1]: spatial 16, efm[0]: spatial 32
    encoder_feature_map = [
        jax.random.normal(k_e0, (B, encoder_hidden_dims[2], sizes[1]), jnp.float32),
        jax.random.normal(k_e1, (B, encoder_hidden_dims[1], sizes[0]), jnp.float32),
        jax.random.normal(k_e2, (B, encoder_hidden_dims[0], last_size[0]), jnp.float32),
    ]

    # ---- run fused Pallas kernel ----
    out = conv_decoder_unet_forward(inpt, encoder_feature_map, params)
    out = jax.block_until_ready(out)
    assert out.shape == (B, out_channels, sizes[-1]), out.shape

    # ---- validate against pure-JAX reference ----
    ref = jax.block_until_ready(_ref_forward(inpt, encoder_feature_map, params))
    np.testing.assert_allclose(np.asarray(out), np.asarray(ref), atol=1e-4, rtol=1e-4)

    print("KERNEL_OK")
</pallas_src>

<mosaic_0001>
module attributes {stable_mosaic.version = 11 : i64} {
  func.func @kernel(%arg0: i32, %arg1: memref<1x16x16xf32, #tpu.memory_space<vmem>>, %arg2: memref<1x4x16xf32, #tpu.memory_space<vmem>>, %arg3: memref<1x4x32xf32, #tpu.memory_space<vmem>>, %arg4: memref<1x4x64xf32, #tpu.memory_space<vmem>>, %arg5: memref<24x16xf32, #tpu.memory_space<vmem>>, %arg6: memref<24x4xf32, #tpu.memory_space<vmem>>, %arg7: memref<3x16x32xf32, #tpu.memory_space<vmem>>, %arg8: memref<8x1xf32, #tpu.memory_space<vmem>>, %arg9: memref<24x8xf32, #tpu.memory_space<vmem>>, %arg10: memref<24x4xf32, #tpu.memory_space<vmem>>, %arg11: memref<3x32x64xf32, #tpu.memory_space<vmem>>, %arg12: memref<8x1xf32, #tpu.memory_space<vmem>>, %arg13: memref<24x8xf32, #tpu.memory_space<vmem>>, %arg14: memref<24x4xf32, #tpu.memory_space<vmem>>, %arg15: memref<3x64x64xf32, #tpu.memory_space<vmem>>, %arg16: memref<8x1xf32, #tpu.memory_space<vmem>>, %arg17: memref<1x8x64xf32, #tpu.memory_space<vmem>>) attributes {dimension_semantics = [#tpu.dimension_semantics<parallel>], iteration_bounds = array<i64: 1>, scalar_prefetch = 0 : i64, scratch_operands = 0 : i64, tpu.core_type = #tpu.core_type<tc>, window_params = [{transform_indices = @transform_0, window_bounds = array<i64: 1, 16, 16>}, {transform_indices = @transform_1, window_bounds = array<i64: 1, 4, 16>}, {transform_indices = @transform_2, window_bounds = array<i64: 1, 4, 32>}, {transform_indices = @transform_3, window_bounds = array<i64: 1, 4, 64>}, {pipeline_mode = #tpu.pipeline_mode<synchronous>, transform_indices = @transform_4, window_bounds = array<i64: 24, 16>}, {pipeline_mode = #tpu.pipeline_mode<synchronous>, transform_indices = @transform_5, window_bounds = array<i64: 24, 4>}, {pipeline_mode = #tpu.pipeline_mode<synchronous>, transform_indices = @transform_6, window_bounds = array<i64: 3, 16, 32>}, {pipeline_mode = #tpu.pipeline_mode<synchronous>, transform_indices = @transform_7, window_bounds = array<i64: 8, 1>}, {pipeline_mode = #tpu.pipeline_mode<synchronous>, transform_indices = @transform_8, window_bounds = array<i64: 24, 8>}, {pipeline_mode = #tpu.pipeline_mode<synchronous>, transform_indices = @transform_9, window_bounds = array<i64: 24, 4>}, {pipeline_mode = #tpu.pipeline_mode<synchronous>, transform_indices = @transform_10, window_bounds = array<i64: 3, 32, 64>}, {pipeline_mode = #tpu.pipeline_mode<synchronous>, transform_indices = @transform_11, window_bounds = array<i64: 8, 1>}, {pipeline_mode = #tpu.pipeline_mode<synchronous>, transform_indices = @transform_12, window_bounds = array<i64: 24, 8>}, {pipeline_mode = #tpu.pipeline_mode<synchronous>, transform_indices = @transform_13, window_bounds = array<i64: 24, 4>}, {pipeline_mode = #tpu.pipeline_mode<synchronous>, transform_indices = @transform_14, window_bounds = array<i64: 3, 64, 64>}, {pipeline_mode = #tpu.pipeline_mode<synchronous>, transform_indices = @transform_15, window_bounds = array<i64: 8, 1>}, {transform_indices = @transform_16, window_bounds = array<i64: 1, 8, 64>}]} {
    %c0 = arith.constant 0 : index
    %c0_0 = arith.constant 0 : index
    %c0_1 = arith.constant 0 : index
    %0 = vector.load %arg1[%c0, %c0_0, %c0_1] : memref<1x16x16xf32, #tpu.memory_space<vmem>>, vector<1x16x16xf32>
    %1 = vector.shape_cast %0 : vector<1x16x16xf32> to vector<16x16xf32>
    %c0_2 = arith.constant 0 : index
    %c0_3 = arith.constant 0 : index
    %c0_4 = arith.constant 0 : index
    %2 = vector.load %arg2[%c0_2, %c0_3, %c0_4] : memref<1x4x16xf32, #tpu.memory_space<vmem>>, vector<1x4x16xf32>
    %3 = vector.shape_cast %2 : vector<1x4x16xf32> to vector<4x16xf32>
    %c0_5 = arith.constant 0 : index
    %c0_6 = arith.constant 0 : index
    %4 = vector.load %arg5[%c0_5, %c0_6] : memref<24x16xf32, #tpu.memory_space<vmem>>, vector<24x16xf32>
    %c0_7 = arith.constant 0 : index
    %c0_8 = arith.constant 0 : index
    %5 = vector.load %arg6[%c0_7, %c0_8] : memref<24x4xf32, #tpu.memory_space<vmem>>, vector<24x4xf32>
    %c0_9 = arith.constant 0 : index
    %c0_10 = arith.constant 0 : index
    %6 = vector.load %arg8[%c0_9, %c0_10] : memref<8x1xf32, #tpu.memory_space<vmem>>, vector<8x1xf32>
    %cst = arith.constant dense<0.000000e+00> : vector<24x16xf32>
    %7 = tpu.matmul %4, %1, %cst {dimension_numbers = #tpu.dot_dimension_numbers<[1], [0], [0], [1], [0, 0, 1, 1], [], []>} : vector<24x16xf32>, vector<16x16xf32>, vector<24x16xf32> -> vector<24x16xf32>
    %cst_11 = arith.constant dense<0.000000e+00> : vector<24x16xf32>
    %8 = tpu.matmul %5, %3, %cst_11 {dimension_numbers = #tpu.dot_dimension_numbers<[1], [0], [0], [1], [0, 0, 1, 1], [], []>} : vector<24x4xf32>, vector<4x16xf32>, vector<24x16xf32> -> vector<24x16xf32>
    %9 = arith.addf %7, %8 : vector<24x16xf32>
    %10 = vector.extract_strided_slice %9 {offsets = [0, 0], sizes = [8, 16], strides = [1, 1]} : vector<24x16xf32> to vector<8x16xf32>
    %c0_12 = arith.constant 0 : index
    %c0_13 = arith.constant 0 : index
    %c0_14 = arith.constant 0 : index
    %11 = vector.load %arg7[%c0_12, %c0_13, %c0_14] : memref<3x16x32xf32, #tpu.memory_space<vmem>>, vector<1x16x32xf32>
    %12 = vector.shape_cast %11 : vector<1x16x32xf32> to vector<16x32xf32>
    %cst_15 = arith.constant dense<0.000000e+00> : vector<8x32xf32>
    %13 = tpu.matmul %10, %12, %cst_15 {dimension_numbers = #tpu.dot_dimension_numbers<[1], [0], [0], [1], [0, 0, 1, 1], [], []>} : vector<8x16xf32>, vector<16x32xf32>, vector<8x32xf32> -> vector<8x32xf32>
    %14 = vector.extract_strided_slice %9 {offsets = [8, 0], sizes = [8, 16], strides = [1, 1]} : vector<24x16xf32> to vector<8x16xf32>
    %c1 = arith.constant 1 : index
    %c0_16 = arith.constant 0 : index
    %c0_17 = arith.constant 0 : index
    %15 = vector.load %arg7[%c1, %c0_16, %c0_17] : memref<3x16x32xf32, #tpu.memory_space<vmem>>, vector<1x16x32xf32>
    %16 = vector.shape_cast %15 : vector<1x16x32xf32> to vector<16x32xf32>
    %cst_18 = arith.constant dense<0.000000e+00> : vector<8x32xf32>
    %17 = tpu.matmul %14, %16, %cst_18 {dimension_numbers = #tpu.dot_dimension_numbers<[1], [0], [0], [1], [0, 0, 1, 1], [], []>} : vector<8x16xf32>, vector<16x32xf32>, vector<8x32xf32> -> vector<8x32xf32>
    %18 = arith.addf %13, %17 : vector<8x32xf32>
    %19 = vector.extract_strided_slice %9 {offsets = [16, 0], sizes = [8, 16], strides = [1, 1]} : vector<24x16xf32> to vector<8x16xf32>
    %c2 = arith.constant 2 : index
    %c0_19 = arith.constant 0 : index
    %c0_20 = arith.constant 0 : index
    %20 = vector.load %arg7[%c2, %c0_19, %c0_20] : memref<3x16x32xf32, #tpu.memory_space<vmem>>, vector<1x16x32xf32>
    %21 = vector.shape_cast %20 : vector<1x16x32xf32> to vector<16x32xf32>
    %cst_21 = arith.constant dense<0.000000e+00> : vector<8x32xf32>
    %22 = tpu.matmul %19, %21, %cst_21 {dimension_numbers = #tpu.dot_dimension_numbers<[1], [0], [0], [1], [0, 0, 1, 1], [], []>} : vector<8x16xf32>, vector<16x32xf32>, vector<8x32xf32> -> vector<8x32xf32>
    %23 = arith.addf %18, %22 : vector<8x32xf32>
    %24 = vector.broadcast %6 : vector<8x1xf32> to vector<8x32xf32>
    %25 = arith.addf %23, %24 : vector<8x32xf32>
    %cst_22 = arith.constant 0.00999999977 : f32
    %26 = vector.broadcast %cst_22 : f32 to vector<8x32xf32>
    %27 = arith.mulf %26, %25 : vector<8x32xf32>
    %28 = arith.maximumf %25, %27 : vector<8x32xf32>
    %c0_23 = arith.constant 0 : index
    %c0_24 = arith.constant 0 : index
    %c0_25 = arith.constant 0 : index
    %29 = vector.load %arg3[%c0_23, %c0_24, %c0_25] : memref<1x4x32xf32, #tpu.memory_space<vmem>>, vector<1x4x32xf32>
    %30 = vector.shape_cast %29 : vector<1x4x32xf32> to vector<4x32xf32>
    %c0_26 = arith.constant 0 : index
    %c0_27 = arith.constant 0 : index
    %31 = vector.load %arg9[%c0_26, %c0_27] : memref<24x8xf32, #tpu.memory_space<vmem>>, vector<24x8xf32>
    %c0_28 = arith.constant 0 : index
    %c0_29 = arith.constant 0 : index
    %32 = vector.load %arg10[%c0_28, %c0_29] : memref<24x4xf32, #tpu.memory_space<vmem>>, vector<24x4xf32>
    %c0_30 = arith.constant 0 : index
    %c0_31 = arith.constant 0 : index
    %33 = vector.load %arg12[%c0_30, %c0_31] : memref<8x1xf32, #tpu.memory_space<vmem>>, vector<8x1xf32>
    %cst_32 = arith.constant dense<0.000000e+00> : vector<24x32xf32>
    %34 = tpu.matmul %31, %28, %cst_32 {dimension_numbers = #tpu.dot_dimension_numbers<[1], [0], [0], [1], [0, 0, 1, 1], [], []>} : vector<24x8xf32>, vector<8x32xf32>, vector<24x32xf32> -> vector<24x32xf32>
    %cst_33 = arith.constant dense<0.000000e+00> : vector<24x32xf32>
    %35 = tpu.matmul %32, %30, %cst_33 {dimension_numbers = #tpu.dot_dimension_numbers<[1], [0], [0], [1], [0, 0, 1, 1], [], []>} : vector<24x4xf32>, vector<4x32xf32>, vector<24x32xf32> -> vector<24x32xf32>
    %36 = arith.addf %34, %35 : vector<24x32xf32>
    %37 = vector.extract_strided_slice %36 {offsets = [0, 0], sizes = [8, 32], strides = [1, 1]} : vector<24x32xf32> to vector<8x32xf32>
    %c0_34 = arith.constant 0 : index
    %c0_35 = arith.constant 0 : index
    %c0_36 = arith.constant 0 : index
    %38 = vector.load %arg11[%c0_34, %c0_35, %c0_36] : memref<3x32x64xf32, #tpu.memory_space<vmem>>, vector<1x32x64xf32>
    %39 = vector.shape_cast %38 : vector<1x32x64xf32> to vector<32x64xf32>
    %cst_37 = arith.constant dense<0.000000e+00> : vector<8x64xf32>
    %40 = tpu.matmul %37, %39, %cst_37 {dimension_numbers = #tpu.dot_dimension_numbers<[1], [0], [0], [1], [0, 0, 1, 1], [], []>} : vector<8x32xf32>, vector<32x64xf32>, vector<8x64xf32> -> vector<8x64xf32>
    %41 = vector.extract_strided_slice %36 {offsets = [8, 0], sizes = [8, 32], strides = [1, 1]} : vector<24x32xf32> to vector<8x32xf32>
    %c1_38 = arith.constant 1 : index
    %c0_39 = arith.constant 0 : index
    %c0_40 = arith.constant 0 : index
    %42 = vector.load %arg11[%c1_38, %c0_39, %c0_40] : memref<3x32x64xf32, #tpu.memory_space<vmem>>, vector<1x32x64xf32>
    %43 = vector.shape_cast %42 : vector<1x32x64xf32> to vector<32x64xf32>
    %cst_41 = arith.constant dense<0.000000e+00> : vector<8x64xf32>
    %44 = tpu.matmul %41, %43, %cst_41 {dimension_numbers = #tpu.dot_dimension_numbers<[1], [0], [0], [1], [0, 0, 1, 1], [], []>} : vector<8x32xf32>, vector<32x64xf32>, vector<8x64xf32> -> vector<8x64xf32>
    %45 = arith.addf %40, %44 : vector<8x64xf32>
    %46 = vector.extract_strided_slice %36 {offsets = [16, 0], sizes = [8, 32], strides = [1, 1]} : vector<24x32xf32> to vector<8x32xf32>
    %c2_42 = arith.constant 2 : index
    %c0_43 = arith.constant 0 : index
    %c0_44 = arith.constant 0 : index
    %47 = vector.load %arg11[%c2_42, %c0_43, %c0_44] : memref<3x32x64xf32, #tpu.memory_space<vmem>>, vector<1x32x64xf32>
    %48 = vector.shape_cast %47 : vector<1x32x64xf32> to vector<32x64xf32>
    %cst_45 = arith.constant dense<0.000000e+00> : vector<8x64xf32>
    %49 = tpu.matmul %46, %48, %cst_45 {dimension_numbers = #tpu.dot_dimension_numbers<[1], [0], [0], [1], [0, 0, 1, 1], [], []>} : vector<8x32xf32>, vector<32x64xf32>, vector<8x64xf32> -> vector<8x64xf32>
    %50 = arith.addf %45, %49 : vector<8x64xf32>
    %51 = vector.broadcast %33 : vector<8x1xf32> to vector<8x64xf32>
    %52 = arith.addf %50, %51 : vector<8x64xf32>
    %cst_46 = arith.constant 0.00999999977 : f32
    %53 = vector.broadcast %cst_46 : f32 to vector<8x64xf32>
    %54 = arith.mulf %53, %52 : vector<8x64xf32>
    %55 = arith.maximumf %52, %54 : vector<8x64xf32>
    %c0_47 = arith.constant 0 : index
    %c0_48 = arith.constant 0 : index
    %c0_49 = arith.constant 0 : index
    %56 = vector.load %arg4[%c0_47, %c0_48, %c0_49] : memref<1x4x64xf32, #tpu.memory_space<vmem>>, vector<1x4x64xf32>
    %57 = vector.shape_cast %56 : vector<1x4x64xf32> to vector<4x64xf32>
    %c0_50 = arith.constant 0 : index
    %c0_51 = arith.constant 0 : index
    %58 = vector.load %arg13[%c0_50, %c0_51] : memref<24x8xf32, #tpu.memory_space<vmem>>, vector<24x8xf32>
    %c0_52 = arith.constant 0 : index
    %c0_53 = arith.constant 0 : index
    %59 = vector.load %arg14[%c0_52, %c0_53] : memref<24x4xf32, #tpu.memory_space<vmem>>, vector<24x4xf32>
    %c0_54 = arith.constant 0 : index
    %c0_55 = arith.constant 0 : index
    %60 = vector.load %arg16[%c0_54, %c0_55] : memref<8x1xf32, #tpu.memory_space<vmem>>, vector<8x1xf32>
    %cst_56 = arith.constant dense<0.000000e+00> : vector<24x64xf32>
    %61 = tpu.matmul %58, %55, %cst_56 {dimension_numbers = #tpu.dot_dimension_numbers<[1], [0], [0], [1], [0, 0, 1, 1], [], []>} : vector<24x8xf32>, vector<8x64xf32>, vector<24x64xf32> -> vector<24x64xf32>
    %cst_57 = arith.constant dense<0.000000e+00> : vector<24x64xf32>
    %62 = tpu.matmul %59, %57, %cst_57 {dimension_numbers = #tpu.dot_dimension_numbers<[1], [0], [0], [1], [0, 0, 1, 1], [], []>} : vector<24x4xf32>, vector<4x64xf32>, vector<24x64xf32> -> vector<24x64xf32>
    %63 = arith.addf %61, %62 : vector<24x64xf32>
    %64 = vector.extract_strided_slice %63 {offsets = [0, 0], sizes = [8, 64], strides = [1, 1]} : vector<24x64xf32> to vector<8x64xf32>
    %c0_58 = arith.constant 0 : index
    %c0_59 = arith.constant 0 : index
    %c0_60 = arith.constant 0 : index
    %65 = vector.load %arg15[%c0_58, %c0_59, %c0_60] : memref<3x64x64xf32, #tpu.memory_space<vmem>>, vector<1x64x64xf32>
    %66 = vector.shape_cast %65 : vector<1x64x64xf32> to vector<64x64xf32>
    %cst_61 = arith.constant dense<0.000000e+00> : vector<8x64xf32>
    %67 = tpu.matmul %64, %66, %cst_61 {dimension_numbers = #tpu.dot_dimension_numbers<[1], [0], [0], [1], [0, 0, 1, 1], [], []>} : vector<8x64xf32>, vector<64x64xf32>, vector<8x64xf32> -> vector<8x64xf32>
    %68 = vector.extract_strided_slice %63 {offsets = [8, 0], sizes = [8, 64], strides = [1, 1]} : vector<24x64xf32> to vector<8x64xf32>
    %c1_62 = arith.constant 1 : index
    %c0_63 = arith.constant 0 : index
    %c0_64 = arith.constant 0 : index
    %69 = vector.load %arg15[%c1_62, %c0_63, %c0_64] : memref<3x64x64xf32, #tpu.memory_space<vmem>>, vector<1x64x64xf32>
    %70 = vector.shape_cast %69 : vector<1x64x64xf32> to vector<64x64xf32>
    %cst_65 = arith.constant dense<0.000000e+00> : vector<8x64xf32>
    %71 = tpu.matmul %68, %70, %cst_65 {dimension_numbers = #tpu.dot_dimension_numbers<[1], [0], [0], [1], [0, 0, 1, 1], [], []>} : vector<8x64xf32>, vector<64x64xf32>, vector<8x64xf32> -> vector<8x64xf32>
    %72 = arith.addf %67, %71 : vector<8x64xf32>
    %73 = vector.extract_strided_slice %63 {offsets = [16, 0], sizes = [8, 64], strides = [1, 1]} : vector<24x64xf32> to vector<8x64xf32>
    %c2_66 = arith.constant 2 : index
    %c0_67 = arith.constant 0 : index
    %c0_68 = arith.constant 0 : index
    %74 = vector.load %arg15[%c2_66, %c0_67, %c0_68] : memref<3x64x64xf32, #tpu.memory_space<vmem>>, vector<1x64x64xf32>
    %75 = vector.shape_cast %74 : vector<1x64x64xf32> to vector<64x64xf32>
    %cst_69 = arith.constant dense<0.000000e+00> : vector<8x64xf32>
    %76 = tpu.matmul %73, %75, %cst_69 {dimension_numbers = #tpu.dot_dimension_numbers<[1], [0], [0], [1], [0, 0, 1, 1], [], []>} : vector<8x64xf32>, vector<64x64xf32>, vector<8x64xf32> -> vector<8x64xf32>
    %77 = arith.addf %72, %76 : vector<8x64xf32>
    %78 = vector.broadcast %60 : vector<8x1xf32> to vector<8x64xf32>
    %79 = arith.addf %77, %78 : vector<8x64xf32>
    %c0_70 = arith.constant 0 : index
    %c0_71 = arith.constant 0 : index
    %c0_72 = arith.constant 0 : index
    %80 = vector.load %arg17[%c0_70, %c0_71, %c0_72] : memref<1x8x64xf32, #tpu.memory_space<vmem>>, vector<1x8x64xf32>
    %81 = vector.shape_cast %80 : vector<1x8x64xf32> to vector<8x64xf32>
    %82 = vector.shape_cast %79 : vector<8x64xf32> to vector<1x8x64xf32>
    tpu.vector_store %arg17[%c0_70, %c0_71, %c0_72], %82 {strides = array<i32>} : memref<1x8x64xf32, #tpu.memory_space<vmem>>, vector<1x8x64xf32>,
    return
  }
  func.func @transform_0(%arg0: i32) -> (i32, i32, i32) {
    %c0_i32 = arith.constant 0 : i32
    %c0_i32_0 = arith.constant 0 : i32
    %c0_i32_1 = arith.constant 0 : i32
    return %arg0, %c0_i32, %c0_i32_0 : i32, i32, i32
  }
  func.func @transform_1(%arg0: i32) -> (i32, i32, i32) {
    %c0_i32 = arith.constant 0 : i32
    %c0_i32_0 = arith.constant 0 : i32
    %c0_i32_1 = arith.constant 0 : i32
    return %arg0, %c0_i32, %c0_i32_0 : i32, i32, i32
  }
  func.func @transform_2(%arg0: i32) -> (i32, i32, i32) {
    %c0_i32 = arith.constant 0 : i32
    %c0_i32_0 = arith.constant 0 : i32
    %c0_i32_1 = arith.constant 0 : i32
    return %arg0, %c0_i32, %c0_i32_0 : i32, i32, i32
  }
  func.func @transform_3(%arg0: i32) -> (i32, i32, i32) {
    %c0_i32 = arith.constant 0 : i32
    %c0_i32_0 = arith.constant 0 : i32
    %c0_i32_1 = arith.constant 0 : i32
    return %arg0, %c0_i32, %c0_i32_0 : i32, i32, i32
  }
  func.func @transform_4(%arg0: i32) -> (i32, i32) {
    %c0_i32 = arith.constant 0 : i32
    %c0_i32_0 = arith.constant 0 : i32
    %c0_i32_1 = arith.constant 0 : i32
    return %c0_i32, %c0_i32_0 : i32, i32
  }
  func.func @transform_5(%arg0: i32) -> (i32, i32) {
    %c0_i32 = arith.constant 0 : i32
    %c0_i32_0 = arith.constant 0 : i32
    %c0_i32_1 = arith.constant 0 : i32
    return %c0_i32, %c0_i32_0 : i32, i32
  }
  func.func @transform_6(%arg0: i32) -> (i32, i32, i32) {
    %c0_i32 = arith.constant 0 : i32
    %c0_i32_0 = arith.constant 0 : i32
    %c0_i32_1 = arith.constant 0 : i32
    %c0_i32_2 = arith.constant 0 : i32
    return %c0_i32, %c0_i32_0, %c0_i32_1 : i32, i32, i32
  }
  func.func @transform_7(%arg0: i32) -> (i32, i32) {
    %c0_i32 = arith.constant 0 : i32
    %c0_i32_0 = arith.constant 0 : i32
    %c0_i32_1 = arith.constant 0 : i32
    return %c0_i32, %c0_i32_0 : i32, i32
  }
  func.func @transform_8(%arg0: i32) -> (i32, i32) {
    %c0_i32 = arith.constant 0 : i32
    %c0_i32_0 = arith.constant 0 : i32
    %c0_i32_1 = arith.constant 0 : i32
    return %c0_i32, %c0_i32_0 : i32, i32
  }
  func.func @transform_9(%arg0: i32) -> (i32, i32) {
    %c0_i32 = arith.constant 0 : i32
    %c0_i32_0 = arith.constant 0 : i32
    %c0_i32_1 = arith.constant 0 : i32
    return %c0_i32, %c0_i32_0 : i32, i32
  }
  func.func @transform_10(%arg0: i32) -> (i32, i32, i32) {
    %c0_i32 = arith.constant 0 : i32
    %c0_i32_0 = arith.constant 0 : i32
    %c0_i32_1 = arith.constant 0 : i32
    %c0_i32_2 = arith.constant 0 : i32
    return %c0_i32, %c0_i32_0, %c0_i32_1 : i32, i32, i32
  }
  func.func @transform_11(%arg0: i32) -> (i32, i32) {
    %c0_i32 = arith.constant 0 : i32
    %c0_i32_0 = arith.constant 0 : i32
    %c0_i32_1 = arith.constant 0 : i32
    return %c0_i32, %c0_i32_0 : i32, i32
  }
  func.func @transform_12(%arg0: i32) -> (i32, i32) {
    %c0_i32 = arith.constant 0 : i32
    %c0_i32_0 = arith.constant 0 : i32
    %c0_i32_1 = arith.constant 0 : i32
    return %c0_i32, %c0_i32_0 : i32, i32
  }
  func.func @transform_13(%arg0: i32) -> (i32, i32) {
    %c0_i32 = arith.constant 0 : i32
    %c0_i32_0 = arith.constant 0 : i32
    %c0_i32_1 = arith.constant 0 : i32
    return %c0_i32, %c0_i32_0 : i32, i32
  }
  func.func @transform_14(%arg0: i32) -> (i32, i32, i32) {
    %c0_i32 = arith.constant 0 : i32
    %c0_i32_0 = arith.constant 0 : i32
    %c0_i32_1 = arith.constant 0 : i32
    %c0_i32_2 = arith.constant 0 : i32
    return %c0_i32, %c0_i32_0, %c0_i32_1 : i32, i32, i32
  }
  func.func @transform_15(%arg0: i32) -> (i32, i32) {
    %c0_i32 = arith.constant 0 : i32
    %c0_i32_0 = arith.constant 0 : i32
    %c0_i32_1 = arith.constant 0 : i32
    return %c0_i32, %c0_i32_0 : i32, i32
  }
  func.func @transform_16(%arg0: i32) -> (i32, i32, i32) {
    %c0_i32 = arith.constant 0 : i32
    %c0_i32_0 = arith.constant 0 : i32
    %c0_i32_1 = arith.constant 0 : i32
    return %arg0, %c0_i32, %c0_i32_0 : i32, i32, i32
  }
}

</mosaic_0001>

<bundles_post_ra>
// kernel: tpu_custom_call.1
= control target key start
LH: loop header
LB: loop body
LE: loop exit
PB: predicated region body
PF: predicated region fallthrough
CT: control target
= control target key end

     0   :  { %s2290_s0 = inlined_call_operand.hbm [shape: f32[1,16,16], index: 0, kind: input, shape index: {}]   ;;  %s2291_s1 = inlined_call_operand.hbm [shape: f32[1,4,16], index: 1, kind: input, shape index: {}]   ;;  %s2292_s2 = inlined_call_operand.hbm [shape: f32[1,4,32], index: 2, kind: input, shape index: {}]   ;;  %s2293_s3 = inlined_call_operand.hbm [shape: f32[1,4,64], index: 3, kind: input, shape index: {}]   ;;  %s2294_s4 = inlined_call_operand.vmem [shape: f32[24,16], index: 4, kind: input, shape index: {}]   ;;  %s2295_s5 = inlined_call_operand.vmem [shape: f32[24,4], index: 5, kind: input, shape index: {}]   ;;  %s2296_s6 = inlined_call_operand.vmem [shape: f32[3,16,32], index: 6, kind: input, shape index: {}]   ;;  %s2297_s7 = inlined_call_operand.vmem [shape: f32[8,1], index: 7, kind: input, shape index: {}]   ;;  %s2298_s8 = inlined_call_operand.vmem [shape: f32[24,8], index: 8, kind: input, shape index: {}]   ;;  %s2299_s9 = inlined_call_operand.vmem [shape: f32[24,4], index: 9, kind: input, shape index: {}]   ;;  %s2300_s10 = inlined_call_operand.hbm [shape: f32[3,32,64], index: 10, kind: input, shape index: {}]   ;;  %s2301_s11 = inlined_call_operand.vmem [shape: f32[8,1], index: 11, kind: input, shape index: {}]   ;;  %s2302_s12 = inlined_call_operand.vmem [shape: f32[24,8], index: 12, kind: input, shape index: {}]   ;;  %s2303_s13 = inlined_call_operand.vmem [shape: f32[24,4], index: 13, kind: input, shape index: {}]   ;;  %s2304_s14 = inlined_call_operand.vmem [shape: f32[3,64,64], index: 14, kind: input, shape index: {}]   ;;  %s2305_s15 = inlined_call_operand.vmem [shape: f32[8,1], index: 15, kind: input, shape index: {}]   ;;  %s2306_s16 = inlined_call_operand.hbm [shape: f32[1,8,64], index: 16, kind: output, shape index: {}]  }
   0x1   :  { %2307 = sst [smem:[#allocation16_spill]] %s2290_s0 }
   0x2   :  { %21 = vsyncpa [#allocation3], 0 }
   0x3   :  { %22 = vsyncpa [#allocation6], 0 }
   0x4   :  { %23 = vsyncpa [#allocation9], 0 }
   0x5   :  { %24 = vsyncpa [#allocation4], 0  ;;  %s1887_s21 = smov [#allocation5]   ;;  %s1888_s23 = smov [#allocation8]  }
   0x6   :  { %s43_s22 = sshll.u32 %s1887_s21, 4  ;;  %s63_s24 = sshll.u32 %s1888_s23, 4  ;;  %s44_s22 = int_to_ptr.vmem [resolvable:$true] %s43_s22  ;;  %s64_s24 = int_to_ptr.vmem [resolvable:$true] %s63_s24 }
   0x7   :  { %s1767_s25 = scalar_lea.vmem %s44_s22, 64  ;;  %p1772_p1 = scmp.lt.s32.totalorder %s44_s22, %s44_s22 }
   0x8   :  { %p1768_p0 = scmp.ne.s32.totalorder %s44_s22, %s1767_s25  ;;  %p1773_p2 = scmp.lt.s32.totalorder %s1767_s25, %s1767_s25 }
   0xa   :  { %p1774_p3 = por %p1773_p2, %p1772_p1 }
   0xc   :  { %p1775_p4 = pnand %p1774_p3, %p1768_p0 }
   0xe   :  { %1778 = shalt.err (!%p1775_p4)
}
   0xf   :  { %46 = dma.hbm_to_vmem [thread:$0]  %s2291_s1, 64, %s44_s22, [#allocation6]  }
  0x10   :  { %s1787_s28 = scalar_lea.vmem %s64_s24, 64  ;;  %p1792_p6 = scmp.lt.s32.totalorder %s64_s24, %s64_s24 }
  0x11   :  { %p1788_p5 = scmp.ne.s32.totalorder %s64_s24, %s1787_s28  ;;  %p1793_p7 = scmp.lt.s32.totalorder %s1787_s28, %s1787_s28 }
  0x13   :  { %p1794_p8 = por %p1793_p7, %p1792_p6 }
  0x15   :  { %p1795_p9 = pnand %p1794_p8, %p1788_p5 }
  0x17   :  { %1798 = shalt.err (!%p1795_p9)
}
  0x18   :  { %66 = dma.hbm_to_vmem [thread:$0]  %s2293_s3, 64, %s64_s24, [#allocation9]  }
  0x19   :  { %s1889_s0 = smov [#allocation2]  }
  0x1a   :  { %s30_s17 = sshll.u32 %s1889_s0, 4  ;;  %s31_s17 = int_to_ptr.vmem [resolvable:$true] %s30_s17 }
  0x1b   :  { %s1807_s18 = scalar_lea.vmem %s31_s17, 256  ;;  %p1812_p11 = scmp.lt.s32.totalorder %s31_s17, %s31_s17 }
  0x1c   :  { %p1808_p10 = scmp.ne.s32.totalorder %s31_s17, %s1807_s18  ;;  %p1813_p12 = scmp.lt.s32.totalorder %s1807_s18, %s1807_s18 }
  0x1e   :  { %p1814_p13 = por %p1813_p12, %p1812_p11 }
  0x20   :  { %p1815_p0 = pnand %p1814_p13, %p1808_p10 }
  0x22   :  { %1818 = shalt.err (!%p1815_p0)
}
  0x23   :  { %s1890_s1 = smov 128   ;;  %s1891_s19 = smov 8  }
  0x24   :  { %s2308_s22 = sld [smem:[#allocation16_spill]]  ;;  %s1892_s23 = smov [#allocation7]  }
  0x25   :  { %s53_s25 = sshll.u32 %s1892_s23, 4  ;;  %s1893_s3 = smov [#allocation10]   ;;  %s54_s25 = int_to_ptr.vmem [resolvable:$true] %s53_s25 }
  0x26   :  { %s84_s24 = sshll.u32 %s1893_s3, 4  ;;  %s1827_s26 = scalar_lea.vmem %s54_s25, 64  ;;  %s85_s24 = int_to_ptr.vmem [resolvable:$true] %s84_s24 }
  0x27   :  { %p1828_p1 = scmp.ne.s32.totalorder %s54_s25, %s1827_s26  ;;  %p1832_p2 = scmp.lt.s32.totalorder %s54_s25, %s54_s25 }
  0x28   :  { %p1833_p3 = scmp.lt.s32.totalorder %s1827_s26, %s1827_s26 }
  0x2a   :  { %36 = dma.hbm_to_vmem [thread:$0]  %s2308_s22, 256, %s31_s17, [#allocation3], %s1890_s1, %s1890_s1, %s1891_s19  }
  0x2b   :  { %p1834_p4 = por %p1833_p3, %p1832_p2 }
  0x2d   :  { %p1835_p5 = pnand %p1834_p4, %p1828_p1 }
  0x2f   :  { %1838 = shalt.err (!%p1835_p5)
}
  0x30   :  { %56 = dma.hbm_to_vmem [thread:$0]  %s2292_s2, 64, %s54_s25, [#allocation6]  }
  0x31   :  { %s1847_s29 = scalar_lea.vmem %s85_s24, 1536  ;;  %p1852_p7 = scmp.lt.s32.totalorder %s85_s24, %s85_s24 }
  0x32   :  { %p1848_p6 = scmp.ne.s32.totalorder %s85_s24, %s1847_s29  ;;  %p1853_p8 = scmp.lt.s32.totalorder %s1847_s29, %s1847_s29 }
  0x34   :  { %p1854_p9 = por %p1853_p8, %p1852_p7 }
  0x36   :  { %p1855_p10 = pnand %p1854_p9, %p1848_p6 }
  0x38   :  { %1858 = shalt.err (!%p1855_p10)
}
  0x39   :  { %90 = dma.hbm_to_vmem [thread:$0]  %s2300_s10, 1536, %s85_s24, [#allocation9], %s1890_s1, %s1890_s1, %s1891_s19  }
  0x3a   :  { %1879 = dma.done.wait [#allocation3], 256  }
  0x3b   :  { %1880 = vsyncadd [#allocation3], 4294967040 }
  0x3c   :  { %1881 = dma.done.wait [#allocation6], 128  }
  0x3d   :  { %1882 = vsyncadd [#allocation6], 4294967168 }
  0x3e   :  { %1883 = dma.done.wait [#allocation9], 1600  }
  0x3f   :  { %1884 = vsyncadd [#allocation9], 4294965696  ;;  %v1894_v0 = vmov 0.0   ;;  %vm1895_vm0 = vmmov 0   ;;  %vm136_vm1 = vcmask 1043456   ;;  %vm126_vm2 = vcmask 31744  }
  0x40   :  { %1744 = vmatprep.subr.mxu1 %v1894_v0  ;;  %1570 = vmatprep.mubr.msk.f32.mxu1 %vm1895_vm0, %v1894_v0  ;;  %v118_v1 = vld [vmem:[#allocation5] sm:$0xf]  ;;  %v123_v2 = vld [vmem:[%s2295_s5 + $0x8] sm:$0xff]  ;;  %v122_v4 = vld [vmem:[%s2295_s5] sm:$0xff]  ;;  %vm220_vm3 = vcmask 130048   ;;  %v1896_v15 = vmov 0  }
  0x41   :  { %1565 = vmatprep.subr.mxu0 %v1894_v0  ;;  %1567 = vmatprep.mubr.msk.f32.mxu0 %vm1895_vm0, %v1894_v0  ;;  %v117_v3 = vld [vmem:[#allocation2 + $0x8] sm:$0xff]  ;;  %v116_v5 = vld [vmem:[#allocation2] sm:$0xff]  ;;  %v124_v6 = vld [vmem:[%s2295_s5 + $0x10] sm:$0xff]  ;;  %vm646_vm4 = vcmask 64512   ;;  %vm745_vm5 = vcmask 261120   ;;  %vm1185_vm6 = vcmask 523264  }
  0x42   :  { %1745 = vmatpush3.msk.msra.mxu1 %vm136_vm1, %v118_v1  ;;  %1566 = vmatpush3.msk.msra.mxu0 %vm136_vm1, %v118_v1  ;;  %v119_v7 = vld [vmem:[%s2294_s4] sm:$0xff]  ;;  %v120_v8 = vld [vmem:[%s2294_s4 + $0x8] sm:$0xff]  ;;  %v121_v9 = vld [vmem:[%s2294_s4 + $0x10] sm:$0xff]  ;;  %s1897_s0 = smov [#allocation11]  }
  0x43   :  { %1571 = vmatmul.mubr.msk.f32.vlgmr.msra.gmra.mxu1 %vm126_vm2, %v123_v2  ;;  %1576 = vmatprep.subr.mxu1 %v1894_v0  ;;  %v311_v10 = vld [vmem:[%s2296_s6 + $0x8] sm:$0xff]  ;;  %v310_v11 = vld [vmem:[%s2296_s6] sm:$0xff]  ;;  %v1447_v12 = vld [vmem:[%s2296_s6 + $0x18] sm:$0xff] }
  0x44   :  { %1573 = vmatprep.mubr.msk.f32.mxu1 %vm1895_vm0, %v1894_v0  ;;  %1577 = vmatpush3.msra.mxu1 %v117_v3  ;;  %v1446_v13 = vld [vmem:[%s2296_s6 + $0x10] sm:$0xff]  ;;  %v125_v14 = vld [vmem:[%s2297_s7] sm:$0xff]  ;;  %v1451_v28 = vld [vmem:[%s2296_s6 + $0x28] sm:$0xff] }
  0x45   :  { %1578 = vmatprep.subr.mxu1 %v1894_v0  ;;  %1568 = vmatmul.mubr.msk.f32.vlgmr.msra.gmra.mxu0 %vm126_vm2, %v122_v4  ;;  %v553_v16 = vld [vmem:[%s2301_s11] sm:$0xff]  ;;  %v546_v34 = vld [vmem:[#allocation7] sm:$0xf]  ;;  %v551_v36 = vld [vmem:[%s2299_s9 + $0x8] sm:$0xff] }
  0x46   :  { %1579 = vmatpush3.msra.mxu1 %v116_v5  ;;  %1589 = vmatprep.subr.mxu0 %v1894_v0  ;;  %v1450_v30 = vld [vmem:[%s2296_s6 + $0x20] sm:$0xff]  ;;  %v552_v37 = vld [vmem:[%s2299_s9 + $0x10] sm:$0xff]  ;;  %v548_v54 = vld [vmem:[%s2298_s8 + $0x8] sm:$0xff] }
  0x47   :  { %1574 = vmatmul.mubr.msk.f32.gmra.mxu1 %vm126_vm2, %v124_v6  ;;  %1596 = vmatprep.subr.mxu1 %v1894_v0  ;;  %v550_v35 = vld [vmem:[%s2299_s9] sm:$0xff]  ;;  %v744_v38 = vld [vmem:[#allocation10 + $0x38] sm:$0xff]  ;;  %v738_v53 = vld [vmem:[#allocation10 + $0x10] sm:$0xff] }
  0x48   :  { %1580 = vmatprep.mubr.msk.f32.mxu1 %vm1895_vm0, %v1894_v0  ;;  %1593 = vmatprep.mubr.msk.f32.mxu0 %vm1895_vm0, %v1894_v0  ;;  %v547_v51 = vld [vmem:[%s2298_s8] sm:$0xff]  ;;  %v739_v52 = vld [vmem:[#allocation10 + $0x18] sm:$0xff]  ;;  %v743_v59 = vld [vmem:[#allocation10 + $0x30] sm:$0xff] }
  0x49   :  { %1590 = vmatpush3.msra.mxu0 %v1447_v12  ;;  %1757 = vset.pattern.permute.xlu0 %v1896_v15  ;;  %v549_v55 = vld [vmem:[%s2298_s8 + $0x10] sm:$0xff]  ;;  %v737_v57 = vld [vmem:[#allocation10 + $0x8] sm:$0xff]  ;;  %v736_v60 = vld [vmem:[#allocation10] sm:$0xff] }
  0x4a   :  { %1591 = vmatprep.subr.mxu0 %v1894_v0  ;;  %1758 = vset.pattern.permute.xlu1 %v1896_v15  ;;  %v742_v62 = vld [vmem:[#allocation10 + $0x28] sm:$0xff]  ;;  %v741_v1 = vld [vmem:[#allocation10 + $0x20] sm:$0xff] }
  0x4b   :  { %1581 = vmatmul.mubr.msk.f32.vlgmr.msra.gmra.mxu1 %vm220_vm3, %v119_v7  ;;  %1592 = vmatpush3.msra.mxu0 %v1446_v13  ;;  %v894_v13 = vld [vmem:[#allocation10 + $0x48] sm:$0xff] }
  0x4c   :  { %1583 = vmatprep.mubr.msk.f32.mxu1 %vm1895_vm0, %v1894_v0  ;;  %1597 = vmatpush3.msra.mxu1 %v311_v10 }
  0x4d   :  { %1598 = vmatprep.subr.mxu1 %v1894_v0  ;;  %1603 = vmatprep.subr.mxu0 %v1894_v0 }
  0x4e   :  { %1599 = vmatpush3.msra.mxu1 %v310_v11  ;;  %540 = vperm.xlu0 %1757, %v125_v14   ;;  %v895_v11 = vld [vmem:[#allocation10 + $0x50] sm:$0xff] }
  0x4f   :  { %1584 = vmatmul.mubr.msk.f32.gmra.mxu1 %vm220_vm3, %v120_v8  ;;  %1610 = vmatprep.subr.mxu1 %v1894_v0 }
  0x50   :  { %1586 = vmatprep.mubr.msk.f32.mxu1 %vm1895_vm0, %v1894_v0 }
  0x52   :  { %973 = vperm.xlu0 %1757, %v553_v16   ;;  %v893_v16 = vld [vmem:[#allocation10 + $0x40] sm:$0xff] }
  0x53   :  { %1587 = vmatmul.mubr.msk.f32.gmra.mxu1 %vm220_vm3, %v121_v9  ;;  %v896_v9 = vld [vmem:[#allocation10 + $0x58] sm:$0xff] }
  0x54   :  { %1600 = vmatprep.mubr.msk.f32.mxu1 %vm1895_vm0, %v1894_v0 }
  0xc9   :  { %v541_v46 = vpop.permute.xlu0 %540 }
 0x103   :  { %v211_v17 = vpop.f32.mrf.mxu1 }
 0x105   :  { %v1572_v18 = vpop.f32.mrf.mxu1  ;;  %v206_v19 = vpop.f32.mrf.mxu0 }
 0x106   :  { %v983_v18 = vld [vmem:[%s2303_s13] sm:$0xff] }
 0x107   :  { %v216_v20 = vpop.f32.mrf.mxu1  ;;  %v1569_v21 = vpop.f32.mrf.mxu0 }
 0x108   :  { %v1477_v21 = vld [vmem:[%s2304_s14 + $0x78] sm:$0xff] }
 0x109   :  { %v1575_v22 = vpop.f32.mrf.mxu1 }
 0x10a   :  { %v1476_v22 = vld [vmem:[%s2304_s14 + $0x70] sm:$0xff] }
 0x10b   :  { %v296_v23 = vpop.f32.mrf.mxu1 }
 0x10c   :  { %v297_v24 = vadd.f32 %v296_v23, %v206_v19  ;;  %v984_v19 = vld [vmem:[%s2303_s13 + $0x8] sm:$0xff] }
 0x10d   :  { %v1582_v25 = vpop.f32.mrf.mxu1  ;;  %v1475_v23 = vld [vmem:[%s2304_s14 + $0x68] sm:$0xff] }
 0x10e   :  { %1601 = vmatmul.mubr.msk.f32.vlgmr.msra.gmra.mxu1 %vm220_vm3, %v297_v24  ;;  %v1474_v24 = vld [vmem:[%s2304_s14 + $0x60] sm:$0xff]  ;;  %v1473_v25 = vld [vmem:[%s2304_s14 + $0x58] sm:$0xff] }
 0x10f   :  { %v301_v26 = vpop.f32.mrf.mxu1  ;;  %1612 = vmatprep.mubr.msk.f32.mxu1 %vm1895_vm0, %v1894_v0  ;;  %1611 = vmatpush3.msk.msra.mxu1 %vm136_vm1, %v546_v34 }
 0x110   :  { %v302_v27 = vadd.f32 %v301_v26, %v211_v17  ;;  %1632 = vmatprep.subr.mxu1 %v1894_v0  ;;  %v979_v17 = vld [vmem:[#allocation8] sm:$0xf] }
 0x111   :  { %v1585_v29 = vpop.f32.mrf.mxu1 }
 0x112   :  { %1594 = vmatmul.mubr.msk.f32.vlgmr.msra.gmra.mxu0 %vm220_vm3, %v302_v27  ;;  %1613 = vmatmul.mubr.msk.f32.vlgmr.msra.gmra.mxu1 %vm126_vm2, %v550_v35 }
 0x113   :  { %v306_v31 = vpop.f32.mrf.mxu1  ;;  %1604 = vmatpush3.msra.mxu0 %v1451_v28  ;;  %1607 = vmatprep.mubr.msk.f32.mxu0 %vm1895_vm0, %v1894_v0 }
 0x114   :  { %v307_v32 = vadd.f32 %v306_v31, %v216_v20  ;;  %1605 = vmatprep.subr.mxu0 %v1894_v0  ;;  %1615 = vmatprep.mubr.msk.f32.mxu1 %vm1895_vm0, %v1894_v0  ;;  %v985_v20 = vld [vmem:[%s2303_s13 + $0x10] sm:$0xff] }
 0x115   :  { %v1588_v33 = vpop.f32.mrf.mxu1  ;;  %1606 = vmatpush3.msra.mxu0 %v1450_v30  ;;  %1633 = vmatpush3.msra.mxu1 %v744_v38  ;;  %v980_v38 = vld [vmem:[%s2302_s12] sm:$0xff] }
 0x116   :  { %1608 = vmatmul.mubr.msk.f32.vlgmr.msra.gmra.mxu0 %vm220_vm3, %v307_v32  ;;  %1621 = vmatprep.subr.mxu0 %v1894_v0  ;;  %v974_v33 = vpop.permute.xlu0 %973 }
 0x117   :  { %1623 = vmatprep.mubr.msk.f32.mxu0 %vm1895_vm0, %v1894_v0  ;;  %1616 = vmatmul.mubr.msk.f32.gmra.mxu1 %vm126_vm2, %v551_v36 }
 0x118   :  { %1618 = vmatprep.mubr.msk.f32.mxu1 %vm1895_vm0, %v1894_v0  ;;  %1634 = vmatprep.subr.mxu1 %v1894_v0 }
 0x119   :  { %1635 = vmatpush3.msra.mxu1 %v743_v59 }
 0x11a   :  { %1636 = vmatprep.subr.mxu1 %v1894_v0 }
 0x11b   :  { %1619 = vmatmul.mubr.msk.f32.gmra.mxu1 %vm126_vm2, %v552_v37 }
 0x11c   :  { %1640 = vmatprep.mubr.msk.f32.mxu1 %vm1895_vm0, %v1894_v0  ;;  %1637 = vmatpush3.msra.mxu1 %v742_v62 }
 0x11d   :  { %1638 = vmatprep.subr.mxu1 %v1894_v0 }
 0x11e   :  { %1639 = vmatpush3.msra.mxu1 %v741_v1  ;;  %v1487_v1 = vld [vmem:[%s2304_s14 + $0xb8] sm:$0xff] }
 0x11f   :  { %1654 = vmatprep.subr.mxu1 %v1894_v0 }
 0x1ce   :  { %v457_v39 = vpop.f32.mrf.mxu1 }
 0x1d0   :  { %v1602_v40 = vpop.f32.mrf.mxu1 }
 0x1d1   :  { %v1174_v40 = vld [vmem:[%s2304_s14 + $0x30] sm:$0xff] }
 0x1d2   :  { %v384_v41 = vpop.f32.mrf.mxu0  ;;  %v632_v56 = vpop.f32.mrf.mxu1 }
 0x1d3   :  { %v458_v43 = vadd.f32 %v457_v39, %v384_v41  ;;  %v1175_v39 = vld [vmem:[%s2304_s14 + $0x38] sm:$0xff]  ;;  %v981_v41 = vld [vmem:[%s2302_s12 + $0x8] sm:$0xff] }
 0x1d4   :  { %v1595_v42 = vpop.f32.mrf.mxu0  ;;  %v1614_v58 = vpop.f32.mrf.mxu1 }
 0x1d5   :  { %v1173_v42 = vld [vmem:[%s2304_s14 + $0x28] sm:$0xff]  ;;  %v986_v58 = vld [vmem:[%s2305_s15] sm:$0xff] }
 0x1d6   :  { %v533_v44 = vpop.f32.mrf.mxu0  ;;  %1417 = vperm.xlu1 %1758, %v986_v58  }
 0x1d7   :  { %v537_v45 = vadd.f32 %v533_v44, %v458_v43  ;;  %v637_v61 = vpop.f32.mrf.mxu1  ;;  %v1172_v43 = vld [vmem:[%s2304_s14 + $0x20] sm:$0xff]  ;;  %v982_v44 = vld [vmem:[%s2302_s12 + $0x10] sm:$0xff]  ;;  %s1428_s12 = sshll.u32 %s1897_s0, 4  ;;  %s1429_s12 = int_to_ptr.vmem [resolvable:$true] %s1428_s12 }
 0x1d8   :  { %v1609_v47 = vpop.f32.mrf.mxu0  ;;  %p1864_p12 = scmp.lt.s32.totalorder %s1429_s12, %s1429_s12 }
 0x1d9   :  { %v543_v48 = vadd.f32 %v541_v46, %v537_v45  ;;  %v1617_v63 = vpop.f32.mrf.mxu1  ;;  %v1171_v45 = vld [vmem:[%s2304_s14 + $0x18] sm:$0xff]  ;;  %v1170_v46 = vld [vmem:[%s2304_s14 + $0x10] sm:$0xff] }
 0x1db   :  { %v544_v49 = vmul.f32 0.01, %v543_v48  ;;  %v642_v2 = vpop.f32.mrf.mxu1 }
 0x1dd   :  { %v545_v50 = vmax.f32 %v543_v48, %v544_v49  ;;  %v1620_v3 = vpop.f32.mrf.mxu1  ;;  %v1169_v48 = vld [vmem:[%s2304_s14 + $0x8] sm:$0xff]  ;;  %v1472_v49 = vld [vmem:[%s2304_s14 + $0x50] sm:$0xff] }
 0x1de   :  { %v1486_v3 = vld [vmem:[%s2304_s14 + $0xb0] sm:$0xff] }
 0x1df   :  { %1622 = vmatpush3.msra.mxu0 %v545_v50 }
 0x1e0   :  { %1624 = vmatmul.mubr.msk.f32.vlgmr.msra.gmra.mxu0 %vm646_vm4, %v547_v51  ;;  %1643 = vmatprep.subr.mxu0 %v1894_v0  ;;  %v1168_v51 = vld [vmem:[%s2304_s14] sm:$0xff] }
 0x1e1   :  { %1626 = vmatprep.mubr.msk.f32.mxu0 %vm1895_vm0, %v1894_v0  ;;  %1644 = vmatpush3.msra.mxu0 %v739_v52  ;;  %v1471_v52 = vld [vmem:[%s2304_s14 + $0x48] sm:$0xff] }
 0x1e2   :  { %1645 = vmatprep.subr.mxu0 %v1894_v0 }
 0x1e3   :  { %1646 = vmatpush3.msra.mxu0 %v738_v53 }
 0x1e4   :  { %1627 = vmatmul.mubr.msk.f32.gmra.mxu0 %vm646_vm4, %v548_v54  ;;  %1647 = vmatprep.subr.mxu0 %v1894_v0  ;;  %v1470_v54 = vld [vmem:[%s2304_s14 + $0x40] sm:$0xff] }
 0x1e5   :  { %1629 = vmatprep.mubr.msk.f32.mxu0 %vm1895_vm0, %v1894_v0  ;;  %1648 = vmatpush3.msra.mxu0 %v737_v57 }
 0x1e6   :  { %1649 = vmatprep.subr.mxu0 %v1894_v0 }
 0x1e7   :  { %1650 = vmatpush3.msra.mxu0 %v736_v60 }
 0x1e8   :  { %1630 = vmatmul.mubr.msk.f32.gmra.mxu0 %vm646_vm4, %v549_v55  ;;  %1665 = vmatprep.subr.mxu0 %v1894_v0 }
 0x1e9   :  { %1651 = vmatprep.mubr.msk.f32.mxu0 %vm1895_vm0, %v1894_v0 }
 0x2a0   :  { %v722_v4 = vpop.f32.mrf.mxu0 }
 0x2a1   :  { %v723_v5 = vadd.f32 %v722_v4, %v632_v56 }
 0x2a2   :  { %v1625_v6 = vpop.f32.mrf.mxu0 }
 0x2a3   :  { %1652 = vmatmul.mubr.msk.f32.vlgmr.msra.gmra.mxu0 %vm745_vm5, %v723_v5  ;;  %v1485_v5 = vld [vmem:[%s2304_s14 + $0xa8] sm:$0xff] }
 0x2a4   :  { %v727_v7 = vpop.f32.mrf.mxu0  ;;  %1667 = vmatprep.mubr.msk.f32.mxu0 %vm1895_vm0, %v1894_v0  ;;  %1666 = vmatpush3.msk.msra.mxu0 %vm136_vm1, %v979_v17 }
 0x2a5   :  { %v728_v8 = vadd.f32 %v727_v7, %v637_v61  ;;  %1687 = vmatprep.subr.mxu0 %v1894_v0  ;;  %v1484_v7 = vld [vmem:[%s2304_s14 + $0xa0] sm:$0xff] }
 0x2a6   :  { %v1628_v10 = vpop.f32.mrf.mxu0 }
 0x2a7   :  { %1641 = vmatmul.mubr.msk.f32.vlgmr.msra.gmra.mxu1 %vm745_vm5, %v728_v8  ;;  %1668 = vmatmul.mubr.msk.f32.vlgmr.msra.gmra.mxu0 %vm126_vm2, %v983_v18  ;;  %v1483_v8 = vld [vmem:[%s2304_s14 + $0x98] sm:$0xff]  ;;  %v1481_v10 = vld [vmem:[%s2304_s14 + $0x88] sm:$0xff] }
 0x2a8   :  { %1655 = vmatpush3.msra.mxu1 %v896_v9  ;;  %v732_v12 = vpop.f32.mrf.mxu0  ;;  %1662 = vmatprep.mubr.msk.f32.mxu1 %vm1895_vm0, %v1894_v0  ;;  %v1482_v9 = vld [vmem:[%s2304_s14 + $0x90] sm:$0xff] }
 0x2a9   :  { %1656 = vmatprep.subr.mxu1 %v1894_v0  ;;  %v733_v15 = vadd.f32 %v732_v12, %v642_v2  ;;  %1670 = vmatprep.mubr.msk.f32.mxu0 %vm1895_vm0, %v1894_v0  ;;  %v1480_v12 = vld [vmem:[%s2304_s14 + $0x80] sm:$0xff]  ;;  %s1859_s14 = scalar_lea.vmem %s1429_s12, 128 }
 0x2aa   :  { %1657 = vmatpush3.msra.mxu1 %v895_v11  ;;  %v1631_v14 = vpop.f32.mrf.mxu0  ;;  %1688 = vmatpush3.msra.mxu0 %v1477_v21  ;;  %p1860_p11 = scmp.ne.s32.totalorder %s1429_s12, %s1859_s14  ;;  %p1865_p13 = scmp.lt.s32.totalorder %s1859_s14, %s1859_s14 }
 0x2ab   :  { %1658 = vmatprep.subr.mxu1 %v1894_v0  ;;  %1671 = vmatmul.mubr.msk.f32.gmra.mxu0 %vm126_vm2, %v984_v19  ;;  %v1418_v19 = vpop.permute.xlu1 %1417 }
 0x2ac   :  { %1659 = vmatpush3.msra.mxu1 %v894_v13  ;;  %1673 = vmatprep.mubr.msk.f32.mxu0 %vm1895_vm0, %v1894_v0  ;;  %p1866_p0 = por %p1865_p13, %p1864_p12 }
 0x2ad   :  { %1660 = vmatprep.subr.mxu1 %v1894_v0  ;;  %1689 = vmatprep.subr.mxu0 %v1894_v0 }
 0x2ae   :  { %1661 = vmatpush3.msra.mxu1 %v893_v16  ;;  %1690 = vmatpush3.msra.mxu0 %v1476_v22  ;;  %p1867_p1 = pnand %p1866_p0, %p1860_p11 }
 0x2af   :  { %1663 = vmatmul.mubr.msk.f32.vlgmr.msra.gmra.mxu1 %vm745_vm5, %v733_v15  ;;  %1676 = vmatprep.subr.mxu1 %v1894_v0 }
 0x2b0   :  { %1678 = vmatprep.mubr.msk.f32.mxu1 %vm1895_vm0, %v1894_v0  ;;  %1674 = vmatmul.mubr.msk.f32.gmra.mxu0 %vm126_vm2, %v985_v20 }
 0x2b1   :  { %1703 = vmatprep.mubr.msk.f32.mxu0 %vm1895_vm0, %v1894_v0  ;;  %1691 = vmatprep.subr.mxu0 %v1894_v0 }
 0x2b2   :  { %1692 = vmatpush3.msra.mxu0 %v1475_v23 }
 0x2b3   :  { %1693 = vmatprep.subr.mxu0 %v1894_v0 }
 0x2b4   :  { %1694 = vmatpush3.msra.mxu0 %v1474_v24 }
 0x2b5   :  { %1695 = vmatprep.subr.mxu0 %v1894_v0 }
 0x2b6   :  { %1696 = vmatpush3.msra.mxu0 %v1473_v25 }
 0x2b7   :  { %1697 = vmatprep.subr.mxu0 %v1894_v0 }
 0x2b8   :  { %1698 = vmatpush3.msra.mxu0 %v1472_v49 }
 0x2b9   :  { %1699 = vmatprep.subr.mxu0 %v1894_v0 }
 0x2ba   :  { %1700 = vmatpush3.msra.mxu0 %v1471_v52 }
 0x2bb   :  { %1701 = vmatprep.subr.mxu0 %v1894_v0 }
 0x2bc   :  { %1702 = vmatpush3.msra.mxu0 %v1470_v54 }
 0x2bd   :  { %1725 = vmatprep.subr.mxu0 %v1894_v0 }
 0x363   :  { %v888_v26 = vpop.f32.mrf.mxu0 }
 0x365   :  { %v1653_v27 = vpop.f32.mrf.mxu0 }
 0x367   :  { %v815_v28 = vpop.f32.mrf.mxu1  ;;  %v1065_v47 = vpop.f32.mrf.mxu0 }
 0x368   :  { %v889_v30 = vadd.f32 %v888_v26, %v815_v28 }
 0x369   :  { %v1642_v29 = vpop.f32.mrf.mxu1  ;;  %v1669_v50 = vpop.f32.mrf.mxu0 }
 0x36b   :  { %v1070_v53 = vpop.f32.mrf.mxu0 }
 0x36d   :  { %v1672_v55 = vpop.f32.mrf.mxu0 }
 0x36f   :  { %v966_v31 = vpop.f32.mrf.mxu1 }
 0x370   :  { %v970_v32 = vadd.f32 %v966_v31, %v889_v30  ;;  %v1075_v56 = vpop.f32.mrf.mxu0 }
 0x371   :  { %v1664_v34 = vpop.f32.mrf.mxu1 }
 0x372   :  { %v976_v35 = vadd.f32 %v974_v33, %v970_v32  ;;  %v1675_v57 = vpop.f32.mrf.mxu0 }
 0x374   :  { %v977_v36 = vmul.f32 0.01, %v976_v35 }
 0x376   :  { %v978_v37 = vmax.f32 %v976_v35, %v977_v36 }
 0x378   :  { %1677 = vmatpush3.msra.mxu1 %v978_v37 }
 0x379   :  { %1679 = vmatmul.mubr.msk.f32.vlgmr.msra.gmra.mxu1 %vm646_vm4, %v980_v38  ;;  %1706 = vmatprep.subr.mxu1 %v1894_v0 }
 0x37a   :  { %1681 = vmatprep.mubr.msk.f32.mxu1 %vm1895_vm0, %v1894_v0  ;;  %1707 = vmatpush3.msra.mxu1 %v1175_v39 }
 0x37b   :  { %1708 = vmatprep.subr.mxu1 %v1894_v0 }
 0x37c   :  { %1709 = vmatpush3.msra.mxu1 %v1174_v40 }
 0x37d   :  { %1682 = vmatmul.mubr.msk.f32.gmra.mxu1 %vm646_vm4, %v981_v41  ;;  %1710 = vmatprep.subr.mxu1 %v1894_v0 }
 0x37e   :  { %1684 = vmatprep.mubr.msk.f32.mxu1 %vm1895_vm0, %v1894_v0  ;;  %1711 = vmatpush3.msra.mxu1 %v1173_v42 }
 0x37f   :  { %1712 = vmatprep.subr.mxu1 %v1894_v0 }
 0x380   :  { %1713 = vmatpush3.msra.mxu1 %v1172_v43 }
 0x381   :  { %1685 = vmatmul.mubr.msk.f32.gmra.mxu1 %vm646_vm4, %v982_v44  ;;  %1714 = vmatprep.subr.mxu1 %v1894_v0 }
 0x382   :  { %1715 = vmatpush3.msra.mxu1 %v1171_v45  ;;  %1722 = vmatprep.mubr.msk.f32.mxu1 %vm1895_vm0, %v1894_v0 }
 0x383   :  { %1716 = vmatprep.subr.mxu1 %v1894_v0 }
 0x384   :  { %1717 = vmatpush3.msra.mxu1 %v1170_v46 }
 0x385   :  { %1718 = vmatprep.subr.mxu1 %v1894_v0 }
 0x386   :  { %1719 = vmatpush3.msra.mxu1 %v1169_v48 }
 0x387   :  { %1720 = vmatprep.subr.mxu1 %v1894_v0 }
 0x388   :  { %1721 = vmatpush3.msra.mxu1 %v1168_v51 }
 0x439   :  { %v1154_v59 = vpop.f32.mrf.mxu1 }
 0x43a   :  { %v1155_v60 = vadd.f32 %v1154_v59, %v1065_v47 }
 0x43b   :  { %v1680_v61 = vpop.f32.mrf.mxu1 }
 0x43c   :  { %1723 = vmatmul.mubr.msk.f32.vlgmr.msra.gmra.mxu1 %vm1185_vm6, %v1155_v60 }
 0x43d   :  { %v1159_v62 = vpop.f32.mrf.mxu1 }
 0x43e   :  { %v1160_v63 = vadd.f32 %v1159_v62, %v1070_v53 }
 0x43f   :  { %v1683_v2 = vpop.f32.mrf.mxu1 }
 0x440   :  { %1704 = vmatmul.mubr.msk.f32.vlgmr.msra.gmra.mxu0 %vm1185_vm6, %v1160_v63 }
 0x441   :  { %1726 = vmatpush3.msra.mxu0 %v1487_v1  ;;  %v1164_v4 = vpop.f32.mrf.mxu1  ;;  %1741 = vmatprep.mubr.msk.f32.mxu0 %vm1895_vm0, %v1894_v0 }
 0x442   :  { %1727 = vmatprep.subr.mxu0 %v1894_v0  ;;  %v1165_v11 = vadd.f32 %v1164_v4, %v1075_v56 }
 0x443   :  { %1728 = vmatpush3.msra.mxu0 %v1486_v3  ;;  %v1686_v6 = vpop.f32.mrf.mxu1 }
 0x444   :  { %1729 = vmatprep.subr.mxu0 %v1894_v0 }
 0x445   :  { %1730 = vmatpush3.msra.mxu0 %v1485_v5 }
 0x446   :  { %1731 = vmatprep.subr.mxu0 %v1894_v0 }
 0x447   :  { %1732 = vmatpush3.msra.mxu0 %v1484_v7 }
 0x448   :  { %1733 = vmatprep.subr.mxu0 %v1894_v0 }
 0x449   :  { %1734 = vmatpush3.msra.mxu0 %v1483_v8 }
 0x44a   :  { %1735 = vmatprep.subr.mxu0 %v1894_v0 }
 0x44b   :  { %1736 = vmatpush3.msra.mxu0 %v1482_v9 }
 0x44c   :  { %1737 = vmatprep.subr.mxu0 %v1894_v0 }
 0x44d   :  { %1738 = vmatpush3.msra.mxu0 %v1481_v10 }
 0x44e   :  { %1739 = vmatprep.subr.mxu0 %v1894_v0 }
 0x44f   :  { %1740 = vmatpush3.msra.mxu0 %v1480_v12 }
 0x450   :  { %1742 = vmatmul.mubr.msk.f32.vlgmr.msra.gmra.mxu0 %vm1185_vm6, %v1165_v11 }
 0x4fc   :  { %v1328_v13 = vpop.f32.mrf.mxu1 }
 0x4fe   :  { %v1724_v14 = vpop.f32.mrf.mxu1 }
 0x500   :  { %v1255_v15 = vpop.f32.mrf.mxu0 }
 0x501   :  { %v1329_v17 = vadd.f32 %v1328_v13, %v1255_v15 }
 0x502   :  { %v1705_v16 = vpop.f32.mrf.mxu0 }
 0x510   :  { %v1410_v18 = vpop.f32.mrf.mxu0 }
 0x511   :  { %v1414_v20 = vadd.f32 %v1410_v18, %v1329_v17 }
 0x512   :  { %v1743_v21 = vpop.f32.mrf.mxu0 }
 0x513   :  { %v1420_v22 = vadd.f32 %v1418_v19, %v1414_v20 }
 0x515   :  { %1421 = vst.msk [vmem:[#allocation11] sm:$0xff] %vm1185_vm6, %v1420_v22 }
 0x516   :  { %1870 = shalt.err (!%p1867_p1)
}
 0x517   :  { %1431 = dma.vmem_to_hbm [thread:$0]  %s1429_s12, 128, %s2306_s16, [#allocation4]  }
 0x518   :  { %1885 = dma.done.wait [#allocation4], 128  }
 0x519   :  { %1886 = vsyncadd [#allocation4], 4294967168 }
 0x51a   :  { %1435 = vsyncpa [#allocation3], 1 }
 0x51b   :  { %1436 = vsyncpa [#allocation6], 1 }
 0x51c   :  { %1437 = vsyncpa [#allocation9], 1 }
 0x51d   :  { %1438 = vsyncpa [#allocation4], 1 }

</bundles_post_ra>
